<compile_context>
chip_gen: v5e
topology: v5e:2x2
jax: 0.10.0
libtpu: 0.0.40
codegen_flags: <defaults>
</compile_context>

<pallas_src>
import jax
import jax.numpy as jnp
from jax.experimental import pallas as pl
from jax.experimental.pallas import tpu as pltpu

_LANE = 128
_NEG_BIG = -1e30


def _round_up(x, m):
    return ((x + m - 1) // m) * m


def _vmem_capacity_bytes():
    """Per-generation VMEM capacity; conservative fallback (v7x per-TC)."""
    try:
        info = pltpu.get_tpu_info()
        cap = getattr(info, "vmem_capacity_bytes", None)
        if cap:
            return int(cap)
    except Exception:
        pass
    return 64 * 1024 * 1024


def _vmem_estimate(tm, tk, hp, cp):
    """Rough VMEM footprint (bytes) of one pipelined grid step."""
    return (2 * tm * tk * 2          # x tile, double-buffered, bf16
            + 2 * tk * hp * 2        # w1 tile, double-buffered, bf16
            + 2 * hp * cp * 2        # w2 (grid-invariant, still double-buffered)
            + tm * hp * 4            # h_acc scratch, f32
            + 2 * tm * cp * 4        # logits output tile, f32
            + 6 * (hp + cp) * 4      # bias / alpha / gamma rows
            + 4 * tm * 4)            # labels tile


# -----------------------------------------------------------------------------
# Fused kernel:
#   grid = (num_batch_tiles, num_k_tiles)
#   per (i, k):  h_acc += x_tile @ w1_tile        (bf16 MXU, f32 accumulate)
#   at k == last:
#     h      = gelu(h_acc)                        (b1 folded into the init)
#     logits = h @ w2 + b2                        -> logits output tile
#     AdaptiveLearnableFocalLoss_V2 per-row loss  -> SMEM per-tile partial sum
# -----------------------------------------------------------------------------
def _fused_kernel(x_ref, w1_ref, b1_ref, w2_ref, b2_ref, labels_ref,
                  alpha_ref, gamma_ref, af_ref,
                  logits_ref, loss_part_ref, h_acc):
    # NOTE: program_id / num_programs are read only at the top level of the
    # kernel body; calling them inside a pl.when body breaks interpret mode.
    k = pl.program_id(1)
    k_last = pl.num_programs(1) - 1

    @pl.when(k == 0)
    def _():
        # Fold the b1 add into the accumulator init (saves a (tm, Hp) VPU add).
        h_acc[...] = jnp.broadcast_to(b1_ref[...], h_acc.shape)

    # First matmul, accumulated over the K (flattened pixel) axis.
    h_acc[...] += jnp.dot(x_ref[...], w1_ref[...],
                          preferred_element_type=jnp.float32)

    @pl.when(k == k_last)
    def _():
        # --- backbone tail ----------------------------------------------------
        h = jax.nn.gelu(h_acc[...], approximate=True)
        logits = jnp.dot(h.astype(w2_ref.dtype), w2_ref[...],
                         preferred_element_type=jnp.float32) + b2_ref[...]
        logits_ref[...] = logits.astype(logits_ref.dtype)

        # --- AdaptiveLearnableFocalLoss_V2 ------------------------------------
        # Padded class columns hold b2 == -1e30 -> vanish from the LSE.
        # Padded batch rows hold label == -1    -> one-hot of zeros -> loss 0.
        tm, cp = logits.shape
        labels = labels_ref[...]                                     # (tm, 1)
        class_ids = jax.lax.broadcasted_iota(jnp.int32, (tm, cp), 1)
        onehot = (class_ids == labels).astype(jnp.float32)           # (tm, cp)

        m = jnp.max(logits, axis=1, keepdims=True)
        lse = m + jnp.log(jnp.sum(jnp.exp(logits - m), axis=1, keepdims=True))
        ce = jnp.sum(onehot * (lse - logits), axis=1, keepdims=True)  # (tm, 1)

        pt = jnp.exp(-ce)                                             # (tm, 1)
        alpha_t = jnp.sum(onehot * alpha_ref[...], axis=1, keepdims=True)
        gamma_t = jnp.sum(onehot * gamma_ref[...], axis=1, keepdims=True)

        one_minus_pt = jnp.maximum(1.0 - pt, 0.0)
        # (1 - pt) ** gamma_t with a safe branch for the base == 0 case
        # (log clamped at 1e-38 because both where-branches are evaluated).
        focal_term = jnp.where(
            one_minus_pt > 0.0,
            jnp.exp(gamma_t * jnp.log(jnp.maximum(one_minus_pt, 1e-38))),
            0.0)
        focal = alpha_t * focal_term * ce

        af = jnp.clip(af_ref[0, 0], 0.0, 1.0)
        combined = af * focal + (1.0 - af) * ce                       # (tm, 1)
        loss_part_ref[0, 0] = jnp.sum(combined)


def fused_forward(x_flat, w1, b1, w2, b2, labels, log_alpha, log_gamma,
                  adaptive_factor):
    """Runs backbone + focal loss in one pallas_call. Returns (logits, loss)."""
    B, Din = x_flat.shape
    Hid = w1.shape[1]
    C = w2.shape[1]

    f32, bf16 = jnp.float32, jnp.bfloat16

    Hp = _round_up(Hid, _LANE)
    Cp = _round_up(C, _LANE)

    # --- batch tile: bf16-friendly sublane multiple; keep >= 2 batch tiles for
    # mid/large B so the "parallel" axis can shard across both v7x TensorCores.
    if B >= 512:
        tm = 256
    elif B >= 256:
        tm = 128
    elif B >= 64:
        tm = _round_up(_round_up(B, 16) // 2, 16)
    else:
        tm = _round_up(B, 16)
    Bp = _round_up(B, tm)
    nb = Bp // tm

    # --- K tile: as large as the per-generation VMEM budget allows (amortizes
    # the per-step h_acc read-modify-write and pipeline overhead), preferring a
    # tk that minimizes K padding of x.
    vmem_cap = _vmem_capacity_bytes()
    budget = min(int(vmem_cap * 0.6), 80 * 1024 * 1024)
    d_aligned = _round_up(Din, _LANE)
    cands = [t for t in (2048, 1024, 512, 256, 128) if t <= d_aligned]
    if not cands:
        cands = [d_aligned]
    fitting = [t for t in cands if _vmem_estimate(tm, t, Hp, Cp) <= budget]
    if not fitting:
        fitting = [cands[-1]]
    tk = min(fitting, key=lambda t: (_round_up(Din, t), -t))
    Dp = _round_up(Din, tk)
    nk = Dp // tk

    # --- operand padding / casting (jnp.pad of width 0 is a no-op, so already
    # tile-aligned inputs are passed through without an extra HBM pass).
    x_b = jnp.pad(x_flat.astype(bf16), ((0, Bp - B), (0, Dp - Din)))
    w1_p = jnp.pad(w1.astype(bf16), ((0, Dp - Din), (0, Hp - Hid)))
    b1_p = jnp.pad(b1.reshape(1, Hid).astype(f32), ((0, 0), (0, Hp - Hid)))
    w2_p = jnp.pad(w2.astype(bf16), ((0, Hp - Hid), (0, Cp - C)))
    # Large negative bias in padded class columns -> they drop out of the LSE.
    b2_p = jnp.pad(b2.reshape(1, C).astype(f32), ((0, 0), (0, Cp - C)),
                   constant_values=_NEG_BIG)
    # Label -1 in padded batch rows -> zero one-hot -> zero loss contribution.
    labels_p = jnp.pad(labels.astype(jnp.int32).reshape(B, 1),
                       ((0, Bp - B), (0, 0)), constant_values=-1)
    alpha_p = jnp.pad(jnp.exp(log_alpha).reshape(1, C).astype(f32),
                      ((0, 0), (0, Cp - C)))
    gamma_p = jnp.pad(jnp.exp(log_gamma).reshape(1, C).astype(f32),
                      ((0, 0), (0, Cp - C)))
    af = jnp.asarray(adaptive_factor, f32).reshape(1, 1)

    flops = 2 * Bp * Dp * Hp + 2 * Bp * Hp * Cp
    bytes_accessed = (Bp * Dp * 2 + nb * Dp * Hp * 2 + Hp * Cp * 2
                      + Bp * Cp * 4 + Bp * 4 + (Hp + 3 * Cp) * 4 + nb * 4)
    cost = pl.CostEstimate(flops=flops,
                           transcendentals=Bp * (Hp + Cp + 4),
                           bytes_accessed=bytes_accessed)

    grid_spec = pltpu.PrefetchScalarGridSpec(
        num_scalar_prefetch=0,
        grid=(nb, nk),
        in_specs=[
            pl.BlockSpec((tm, tk), lambda i, k: (i, k)),                 # x
            pl.BlockSpec((tk, Hp), lambda i, k: (k, 0)),                 # w1
            pl.BlockSpec((1, Hp), lambda i, k: (0, 0)),                  # b1
            pl.BlockSpec((Hp, Cp), lambda i, k: (0, 0)),                 # w2
            pl.BlockSpec((1, Cp), lambda i, k: (0, 0)),                  # b2
            pl.BlockSpec((tm, 1), lambda i, k: (i, 0)),                  # labels
            pl.BlockSpec((1, Cp), lambda i, k: (0, 0)),                  # alpha
            pl.BlockSpec((1, Cp), lambda i, k: (0, 0)),                  # gamma
            pl.BlockSpec(memory_space=pltpu.MemorySpace.SMEM),           # adaptive
        ],
        out_specs=[
            pl.BlockSpec((tm, Cp), lambda i, k: (i, 0)),                 # logits
            pl.BlockSpec((1, 1), lambda i, k: (i, 0),
                         memory_space=pltpu.MemorySpace.SMEM),           # loss part
        ],
        scratch_shapes=[pltpu.VMEM((tm, Hp), jnp.float32)],
    )

    est = _vmem_estimate(tm, tk, Hp, Cp)
    vmem_limit = int(min(max(2 * est, 32 * 1024 * 1024),
                         max(vmem_cap - 2 * 1024 * 1024, 32 * 1024 * 1024)))

    logits_p, loss_parts = pl.pallas_call(
        _fused_kernel,
        grid_spec=grid_spec,
        out_shape=(
            jax.ShapeDtypeStruct((Bp, Cp), jnp.float32),
            jax.ShapeDtypeStruct((nb, 1), jnp.float32),
        ),
        compiler_params=pltpu.CompilerParams(
            dimension_semantics=("parallel", "arbitrary"),
            vmem_limit_bytes=vmem_limit,
        ),
        cost_estimate=cost,
    )(x_b, w1_p, b1_p, w2_p, b2_p, labels_p, alpha_p, gamma_p, af)

    logits = logits_p[:B, :C]
    loss = jnp.sum(loss_parts) / B
    return logits, loss


# -----------------------------------------------------------------------------
# Module wrapper
# -----------------------------------------------------------------------------
def init_params(key, in_features, hidden, num_classes,
                alpha_init=1.0, gamma_init=2.0):
    k1, k2, k3, k4 = jax.random.split(key, 4)
    return {
        "w1": jax.random.normal(k1, (in_features, hidden), jnp.float32) * 0.02,
        "b1": jax.random.normal(k2, (hidden,), jnp.float32) * 0.01,
        "w2": jax.random.normal(k3, (hidden, num_classes), jnp.float32) * 0.02,
        "b2": jax.random.normal(k4, (num_classes,), jnp.float32) * 0.01,
        # AdaptiveLearnableFocalLoss_V2 learnable parameters
        "log_alpha": jnp.log(jnp.ones((num_classes,), jnp.float32) * alpha_init),
        "log_gamma": jnp.log(jnp.ones((num_classes,), jnp.float32) * gamma_init),
        "adaptive_factor": jnp.asarray(0.5, jnp.float32),
    }


@jax.jit
def custom_dinat_forward(params, pixel_values, labels=None):
    # pixel_values: NCHW (B, C, H, W), flattened row-major like torch reshape.
    B = pixel_values.shape[0]
    x_flat = pixel_values.reshape(B, -1)
    if labels is None:
        dummy = jnp.zeros((B,), jnp.int32)
        logits, _ = fused_forward(x_flat, params["w1"], params["b1"],
                                  params["w2"], params["b2"], dummy,
                                  params["log_alpha"], params["log_gamma"],
                                  params["adaptive_factor"])
        return {"logits": logits}
    logits, loss = fused_forward(x_flat, params["w1"], params["b1"],
                                 params["w2"], params["b2"], labels,
                                 params["log_alpha"], params["log_gamma"],
                                 params["adaptive_factor"])
    return {"loss": loss, "logits": logits}


# -----------------------------------------------------------------------------
# Pure-JAX reference (same bf16-operand / f32-accumulation numerics)
# -----------------------------------------------------------------------------
def reference_forward(params, pixel_values, labels):
    B = pixel_values.shape[0]
    x = pixel_values.reshape(B, -1)
    xb = x.astype(jnp.bfloat16)
    w1b = params["w1"].astype(jnp.bfloat16)
    w2b = params["w2"].astype(jnp.bfloat16)

    h = jax.nn.gelu(jnp.dot(xb, w1b, preferred_element_type=jnp.float32)
                    + params["b1"], approximate=True)
    logits = (jnp.dot(h.astype(jnp.bfloat16), w2b,
                      preferred_element_type=jnp.float32) + params["b2"])

    logp = jax.nn.log_softmax(logits, axis=-1)
    ce = -jnp.take_along_axis(logp, labels[:, None], axis=1)[:, 0]
    pt = jnp.exp(-ce)
    alpha_t = jnp.exp(params["log_alpha"])[labels]
    gamma_t = jnp.exp(params["log_gamma"])[labels]
    focal = alpha_t * (1.0 - pt) ** gamma_t * ce
    af = jnp.clip(params["adaptive_factor"], 0.0, 1.0)
    loss = jnp.mean(af * focal + (1.0 - af) * ce)
    return {"loss": loss, "logits": logits}


if __name__ == "__main__":
    B, C, H, W = 2, 4, 16, 16
    hidden = 32
    num_classes = 8

    key = jax.random.PRNGKey(0)
    k_params, k_pix, k_lab = jax.random.split(key, 3)

    params = init_params(k_params, C * H * W, hidden, num_classes)
    pixel_values = jax.random.normal(k_pix, (B, C, H, W), jnp.float32)
    labels = jax.random.randint(k_lab, (B,), 0, num_classes, jnp.int32)

    out = custom_dinat_forward(params, pixel_values, labels)
    jax.block_until_ready(out)

    ref = reference_forward(params, pixel_values, labels)
    assert out["logits"].shape == (B, num_classes)
    assert jnp.allclose(out["logits"], ref["logits"], atol=5e-3, rtol=5e-2), (
        out["logits"], ref["logits"])
    assert jnp.allclose(out["loss"], ref["loss"], atol=5e-3, rtol=1e-2), (
        out["loss"], ref["loss"])

    print("KERNEL_OK")
</pallas_src>

<mosaic_0001>
module attributes {stable_mosaic.version = 11 : i64} {
  func.func @_fused_kernel(%arg0: i32, %arg1: i32, %arg2: memref<16x1024xbf16, #tpu.memory_space<vmem>>, %arg3: memref<1024x128xbf16, #tpu.memory_space<vmem>>, %arg4: memref<1x128xf32, #tpu.memory_space<vmem>>, %arg5: memref<128x128xbf16, #tpu.memory_space<vmem>>, %arg6: memref<1x128xf32, #tpu.memory_space<vmem>>, %arg7: memref<16x1xi32, #tpu.memory_space<vmem>>, %arg8: memref<1x128xf32, #tpu.memory_space<vmem>>, %arg9: memref<1x128xf32, #tpu.memory_space<vmem>>, %arg10: memref<1x1xf32, #tpu.memory_space<smem>>, %arg11: memref<16x128xf32, #tpu.memory_space<vmem>>, %arg12: memref<1x1xf32, #tpu.memory_space<smem>>, %arg13: memref<16x128xf32, #tpu.memory_space<vmem>>) attributes {dimension_semantics = [#tpu.dimension_semantics<parallel>, #tpu.dimension_semantics<arbitrary>], iteration_bounds = array<i64: 1, 1>, scalar_prefetch = 0 : i64, scratch_operands = 1 : i64, tpu.core_type = #tpu.core_type<tc>, window_params = [{transform_indices = @transform_0, window_bounds = array<i64: 16, 1024>}, {transform_indices = @transform_1, window_bounds = array<i64: 1024, 128>}, {pipeline_mode = #tpu.pipeline_mode<synchronous>, transform_indices = @transform_2, window_bounds = array<i64: 1, 128>}, {pipeline_mode = #tpu.pipeline_mode<synchronous>, transform_indices = @transform_3, window_bounds = array<i64: 128, 128>}, {pipeline_mode = #tpu.pipeline_mode<synchronous>, transform_indices = @transform_4, window_bounds = array<i64: 1, 128>}, {transform_indices = @transform_5, window_bounds = array<i64: 16, 1>}, {pipeline_mode = #tpu.pipeline_mode<synchronous>, transform_indices = @transform_6, window_bounds = array<i64: 1, 128>}, {pipeline_mode = #tpu.pipeline_mode<synchronous>, transform_indices = @transform_7, window_bounds = array<i64: 1, 128>}, {transform_indices = @transform_8, window_bounds = array<i64: 1, 1>}, {transform_indices = @transform_9, window_bounds = array<i64: 16, 128>}, {transform_indices = @transform_10, window_bounds = array<i64: 1, 1>}]} {
    %c0_i32 = arith.constant 0 : i32
    %0 = arith.cmpi eq, %arg1, %c0_i32 : i32
    %1 = arith.extui %0 : i1 to i32
    %c0_i32_0 = arith.constant 0 : i32
    %2 = arith.cmpi ne, %1, %c0_i32_0 : i32
    scf.if %2 {
      %c0_10 = arith.constant 0 : index
      %c0_11 = arith.constant 0 : index
      %12 = vector.load %arg4[%c0_10, %c0_11] : memref<1x128xf32, #tpu.memory_space<vmem>>, vector<1x128xf32>
      %13 = vector.shape_cast %12 : vector<1x128xf32> to vector<1x128xf32>
      %14 = vector.broadcast %13 : vector<1x128xf32> to vector<16x128xf32>
      %c0_12 = arith.constant 0 : index
      %c0_13 = arith.constant 0 : index
      %15 = vector.load %arg13[%c0_12, %c0_13] : memref<16x128xf32, #tpu.memory_space<vmem>>, vector<16x128xf32>
      tpu.vector_store %arg13[%c0_12, %c0_13], %14 {strides = array<i32>} : memref<16x128xf32, #tpu.memory_space<vmem>>, vector<16x128xf32>,
    } else {
    }
    %c0 = arith.constant 0 : index
    %c0_1 = arith.constant 0 : index
    %3 = vector.load %arg13[%c0, %c0_1] : memref<16x128xf32, #tpu.memory_space<vmem>>, vector<16x128xf32>
    %c0_2 = arith.constant 0 : index
    %c0_3 = arith.constant 0 : index
    %4 = vector.load %arg2[%c0_2, %c0_3] : memref<16x1024xbf16, #tpu.memory_space<vmem>>, vector<16x1024xbf16>
    %c0_4 = arith.constant 0 : index
    %c0_5 = arith.constant 0 : index
    %5 = vector.load %arg3[%c0_4, %c0_5] : memref<1024x128xbf16, #tpu.memory_space<vmem>>, vector<1024x128xbf16>
    %cst = arith.constant dense<0.000000e+00> : vector<16x128xf32>
    %6 = tpu.matmul %4, %5, %cst {dimension_numbers = #tpu.dot_dimension_numbers<[1], [0], [0], [1], [0, 0, 1, 1], [], []>} : vector<16x1024xbf16>, vector<1024x128xbf16>, vector<16x128xf32> -> vector<16x128xf32>
    %7 = arith.addf %3, %6 : vector<16x128xf32>
    %c0_6 = arith.constant 0 : index
    %c0_7 = arith.constant 0 : index
    %8 = vector.load %arg13[%c0_6, %c0_7] : memref<16x128xf32, #tpu.memory_space<vmem>>, vector<16x128xf32>
    tpu.vector_store %arg13[%c0_6, %c0_7], %7 {strides = array<i32>} : memref<16x128xf32, #tpu.memory_space<vmem>>, vector<16x128xf32>,
    %c0_i32_8 = arith.constant 0 : i32
    %9 = arith.cmpi eq, %arg1, %c0_i32_8 : i32
    %10 = arith.extui %9 : i1 to i32
    %c0_i32_9 = arith.constant 0 : i32
    %11 = arith.cmpi ne, %10, %c0_i32_9 : i32
    scf.if %11 {
      %c0_10 = arith.constant 0 : index
      %c0_11 = arith.constant 0 : index
      %12 = vector.load %arg13[%c0_10, %c0_11] : memref<16x128xf32, #tpu.memory_space<vmem>>, vector<16x128xf32>
      %13 = arith.mulf %12, %12 : vector<16x128xf32>
      %14 = arith.mulf %12, %13 : vector<16x128xf32>
      %cst_12 = arith.constant 4.471500e-02 : f32
      %15 = vector.broadcast %cst_12 : f32 to vector<16x128xf32>
      %16 = arith.mulf %15, %14 : vector<16x128xf32>
      %17 = arith.addf %12, %16 : vector<16x128xf32>
      %cst_13 = arith.constant 0.797884583 : f32
      %18 = vector.broadcast %cst_13 : f32 to vector<16x128xf32>
      %19 = arith.mulf %18, %17 : vector<16x128xf32>
      %20 = math.tanh %19 : vector<16x128xf32>
      %cst_14 = arith.constant 1.000000e+00 : f32
      %21 = vector.broadcast %cst_14 : f32 to vector<16x128xf32>
      %22 = arith.addf %21, %20 : vector<16x128xf32>
      %cst_15 = arith.constant 5.000000e-01 : f32
      %23 = vector.broadcast %cst_15 : f32 to vector<16x128xf32>
      %24 = arith.mulf %23, %22 : vector<16x128xf32>
      %25 = arith.mulf %12, %24 : vector<16x128xf32>
      %26 = arith.truncf %25 : vector<16x128xf32> to vector<16x128xbf16>
      %c0_16 = arith.constant 0 : index
      %c0_17 = arith.constant 0 : index
      %27 = vector.load %arg5[%c0_16, %c0_17] : memref<128x128xbf16, #tpu.memory_space<vmem>>, vector<128x128xbf16>
      %cst_18 = arith.constant dense<0.000000e+00> : vector<16x128xf32>
      %28 = tpu.matmul %26, %27, %cst_18 {dimension_numbers = #tpu.dot_dimension_numbers<[1], [0], [0], [1], [0, 0, 1, 1], [], []>} : vector<16x128xbf16>, vector<128x128xbf16>, vector<16x128xf32> -> vector<16x128xf32>
      %c0_19 = arith.constant 0 : index
      %c0_20 = arith.constant 0 : index
      %29 = vector.load %arg6[%c0_19, %c0_20] : memref<1x128xf32, #tpu.memory_space<vmem>>, vector<1x128xf32>
      %30 = vector.broadcast %29 : vector<1x128xf32> to vector<16x128xf32>
      %31 = arith.addf %28, %30 : vector<16x128xf32>
      %c0_21 = arith.constant 0 : index
      %c0_22 = arith.constant 0 : index
      %32 = vector.load %arg11[%c0_21, %c0_22] : memref<16x128xf32, #tpu.memory_space<vmem>>, vector<16x128xf32>
      tpu.vector_store %arg11[%c0_21, %c0_22], %31 {strides = array<i32>} : memref<16x128xf32, #tpu.memory_space<vmem>>, vector<16x128xf32>,
      %c0_23 = arith.constant 0 : index
      %c0_24 = arith.constant 0 : index
      %33 = vector.load %arg7[%c0_23, %c0_24] : memref<16x1xi32, #tpu.memory_space<vmem>>, vector<16x1xi32>
      %34 = tpu.iota {dimensions = array<i32: 1>} : vector<16x128xi32>
      %35 = vector.broadcast %33 : vector<16x1xi32> to vector<16x128xi32>
      %36 = arith.cmpi eq, %34, %35 : vector<16x128xi32>
      %37 = arith.extui %36 : vector<16x128xi1> to vector<16x128xi32>
      %38 = arith.sitofp %37 : vector<16x128xi32> to vector<16x128xf32>
      %cst_25 = arith.constant dense<0xFF800000> : vector<16xf32>
      %39 = vector.multi_reduction <maximumf>, %31, %cst_25 [1] : vector<16x128xf32> to vector<16xf32>
      %40 = vector.shape_cast %39 : vector<16xf32> to vector<16x1xf32>
      %41 = vector.broadcast %40 : vector<16x1xf32> to vector<16x128xf32>
      %42 = arith.subf %31, %41 : vector<16x128xf32>
      %43 = math.exp %42 : vector<16x128xf32>
      %cst_26 = arith.constant dense<0.000000e+00> : vector<16xf32>
      %44 = vector.multi_reduction <add>, %43, %cst_26 [1] : vector<16x128xf32> to vector<16xf32>
      %45 = vector.shape_cast %44 : vector<16xf32> to vector<16x1xf32>
      %46 = math.log %45 : vector<16x1xf32>
      %47 = arith.addf %40, %46 : vector<16x1xf32>
      %48 = vector.broadcast %47 : vector<16x1xf32> to vector<16x128xf32>
      %49 = arith.subf %48, %31 : vector<16x128xf32>
      %50 = arith.mulf %38, %49 : vector<16x128xf32>
      %cst_27 = arith.constant dense<0.000000e+00> : vector<16xf32>
      %51 = vector.multi_reduction <add>, %50, %cst_27 [1] : vector<16x128xf32> to vector<16xf32>
      %52 = vector.shape_cast %51 : vector<16xf32> to vector<16x1xf32>
      %cst_28 = arith.constant 0.000000e+00 : f32
      %53 = vector.broadcast %cst_28 : f32 to vector<16x1xf32>
      %54 = arith.subf %53, %52 : vector<16x1xf32>
      %55 = math.exp %54 : vector<16x1xf32>
      %c0_29 = arith.constant 0 : index
      %c0_30 = arith.constant 0 : index
      %56 = vector.load %arg8[%c0_29, %c0_30] : memref<1x128xf32, #tpu.memory_space<vmem>>, vector<1x128xf32>
      %57 = vector.broadcast %56 : vector<1x128xf32> to vector<16x128xf32>
      %58 = arith.mulf %38, %57 : vector<16x128xf32>
      %cst_31 = arith.constant dense<0.000000e+00> : vector<16xf32>
      %59 = vector.multi_reduction <add>, %58, %cst_31 [1] : vector<16x128xf32> to vector<16xf32>
      %60 = vector.shape_cast %59 : vector<16xf32> to vector<16x1xf32>
      %c0_32 = arith.constant 0 : index
      %c0_33 = arith.constant 0 : index
      %61 = vector.load %arg9[%c0_32, %c0_33] : memref<1x128xf32, #tpu.memory_space<vmem>>, vector<1x128xf32>
      %62 = vector.broadcast %61 : vector<1x128xf32> to vector<16x128xf32>
      %63 = arith.mulf %38, %62 : vector<16x128xf32>
      %cst_34 = arith.constant dense<0.000000e+00> : vector<16xf32>
      %64 = vector.multi_reduction <add>, %63, %cst_34 [1] : vector<16x128xf32> to vector<16xf32>
      %65 = vector.shape_cast %64 : vector<16xf32> to vector<16x1xf32>
      %cst_35 = arith.constant 1.000000e+00 : f32
      %66 = vector.broadcast %cst_35 : f32 to vector<16x1xf32>
      %67 = arith.subf %66, %55 : vector<16x1xf32>
      %cst_36 = arith.constant 0.000000e+00 : f32
      %68 = vector.broadcast %cst_36 : f32 to vector<16x1xf32>
      %69 = arith.maximumf %67, %68 : vector<16x1xf32>
      %cst_37 = arith.constant 0.000000e+00 : f32
      %70 = vector.broadcast %cst_37 : f32 to vector<16x1xf32>
      %71 = arith.cmpf ogt, %69, %70 : vector<16x1xf32>
      %cst_38 = arith.constant 9.99999935E-39 : f32
      %72 = vector.broadcast %cst_38 : f32 to vector<16x1xf32>
      %73 = arith.maximumf %69, %72 : vector<16x1xf32>
      %74 = math.log %73 : vector<16x1xf32>
      %75 = arith.mulf %65, %74 : vector<16x1xf32>
      %76 = math.exp %75 : vector<16x1xf32>
      %cst_39 = arith.constant 0.000000e+00 : f32
      %77 = vector.broadcast %cst_39 : f32 to vector<16x1xf32>
      %78 = arith.select %71, %76, %77 : vector<16x1xi1>, vector<16x1xf32>
      %79 = arith.mulf %60, %78 : vector<16x1xf32>
      %80 = arith.mulf %79, %52 : vector<16x1xf32>
      %c0_40 = arith.constant 0 : index
      %c0_41 = arith.constant 0 : index
      %81 = memref.load %arg10[%c0_40, %c0_41] : memref<1x1xf32, #tpu.memory_space<smem>>
      %cst_42 = arith.constant 0.000000e+00 : f32
      %cst_43 = arith.constant 1.000000e+00 : f32
      %82 = arith.maximumf %cst_42, %81 : f32
      %83 = arith.minimumf %cst_43, %82 : f32
      %84 = vector.broadcast %83 : f32 to vector<16x1xf32>
      %85 = arith.mulf %84, %80 : vector<16x1xf32>
      %cst_44 = arith.constant 1.000000e+00 : f32
      %86 = arith.subf %cst_44, %83 : f32
      %87 = vector.broadcast %86 : f32 to vector<16x1xf32>
      %88 = arith.mulf %87, %52 : vector<16x1xf32>
      %89 = arith.addf %85, %88 : vector<16x1xf32>
      %90 = vector.shape_cast %89 : vector<16x1xf32> to vector<1x16x1xf32>
      %cst_45 = arith.constant dense<0.000000e+00> : vector<1xf32>
      %91 = vector.multi_reduction <add>, %90, %cst_45 [1, 2] : vector<1x16x1xf32> to vector<1xf32>
      %92 = vector.shape_cast %91 : vector<1xf32> to vector<1x1x1xf32>
      %93 = vector.extract %92[0, 0, 0] : f32 from vector<1x1x1xf32>
      %c0_46 = arith.constant 0 : index
      %c0_47 = arith.constant 0 : index
      %94 = memref.load %arg12[%c0_46, %c0_47] : memref<1x1xf32, #tpu.memory_space<smem>>
      memref.store %93, %arg12[%c0_46, %c0_47] : memref<1x1xf32, #tpu.memory_space<smem>>
    } else {
    }
    return
  }
  func.func @transform_0(%arg0: i32, %arg1: i32) -> (i32, i32) {
    %c0_i32 = arith.constant 0 : i32
    return %arg0, %arg1 : i32, i32
  }
  func.func @transform_1(%arg0: i32, %arg1: i32) -> (i32, i32) {
    %c0_i32 = arith.constant 0 : i32
    %c0_i32_0 = arith.constant 0 : i32
    return %arg1, %c0_i32 : i32, i32
  }
  func.func @transform_2(%arg0: i32, %arg1: i32) -> (i32, i32) {
    %c0_i32 = arith.constant 0 : i32
    %c0_i32_0 = arith.constant 0 : i32
    %c0_i32_1 = arith.constant 0 : i32
    return %c0_i32, %c0_i32_0 : i32, i32
  }
  func.func @transform_3(%arg0: i32, %arg1: i32) -> (i32, i32) {
    %c0_i32 = arith.constant 0 : i32
    %c0_i32_0 = arith.constant 0 : i32
    %c0_i32_1 = arith.constant 0 : i32
    return %c0_i32, %c0_i32_0 : i32, i32
  }
  func.func @transform_4(%arg0: i32, %arg1: i32) -> (i32, i32) {
    %c0_i32 = arith.constant 0 : i32
    %c0_i32_0 = arith.constant 0 : i32
    %c0_i32_1 = arith.constant 0 : i32
    return %c0_i32, %c0_i32_0 : i32, i32
  }
  func.func @transform_5(%arg0: i32, %arg1: i32) -> (i32, i32) {
    %c0_i32 = arith.constant 0 : i32
    %c0_i32_0 = arith.constant 0 : i32
    return %arg0, %c0_i32 : i32, i32
  }
  func.func @transform_6(%arg0: i32, %arg1: i32) -> (i32, i32) {
    %c0_i32 = arith.constant 0 : i32
    %c0_i32_0 = arith.constant 0 : i32
    %c0_i32_1 = arith.constant 0 : i32
    return %c0_i32, %c0_i32_0 : i32, i32
  }
  func.func @transform_7(%arg0: i32, %arg1: i32) -> (i32, i32) {
    %c0_i32 = arith.constant 0 : i32
    %c0_i32_0 = arith.constant 0 : i32
    %c0_i32_1 = arith.constant 0 : i32
    return %c0_i32, %c0_i32_0 : i32, i32
  }
  func.func @transform_8(%arg0: i32, %arg1: i32) -> (i32, i32) {
    %c0_i32 = arith.constant 0 : i32
    %c0_i32_0 = arith.constant 0 : i32
    %c0_i32_1 = arith.constant 0 : i32
    return %c0_i32, %c0_i32_0 : i32, i32
  }
  func.func @transform_9(%arg0: i32, %arg1: i32) -> (i32, i32) {
    %c0_i32 = arith.constant 0 : i32
    %c0_i32_0 = arith.constant 0 : i32
    return %arg0, %c0_i32 : i32, i32
  }
  func.func @transform_10(%arg0: i32, %arg1: i32) -> (i32, i32) {
    %c0_i32 = arith.constant 0 : i32
    %c0_i32_0 = arith.constant 0 : i32
    return %arg0, %c0_i32 : i32, i32
  }
}

</mosaic_0001>

<bundles_post_ra>
// kernel: custom_dinat_forward.1
= control target key start
LH: loop header
LB: loop body
LE: loop exit
PB: predicated region body
PF: predicated region fallthrough
CT: control target
= control target key end

     0   :  { %s1779_s0 = inlined_call_operand.vmem [shape: bf16[16,1024], index: 0, kind: input, shape index: {}]   ;;  %s1780_s1 = inlined_call_operand.vmem [shape: bf16[1024,128], index: 1, kind: input, shape index: {}]   ;;  %s1781_s2 = inlined_call_operand.vmem [shape: f32[1,128], index: 2, kind: input, shape index: {}]   ;;  %s1782_s3 = inlined_call_operand.vmem [shape: bf16[128,128], index: 3, kind: input, shape index: {}]   ;;  %s1783_s4 = inlined_call_operand.vmem [shape: f32[1,128], index: 4, kind: input, shape index: {}]   ;;  %s1784_s5 = inlined_call_operand.vmem [shape: s32[16,1], index: 5, kind: input, shape index: {}]   ;;  %s1785_s6 = inlined_call_operand.vmem [shape: f32[1,128], index: 6, kind: input, shape index: {}]   ;;  %s1786_s7 = inlined_call_operand.vmem [shape: f32[1,128], index: 7, kind: input, shape index: {}]   ;;  %s1787_s8 = inlined_call_operand.<no memory space> [shape: f32[1,1], index: 8, kind: input, shape index: {}]   ;;  %s1788_s9 = inlined_call_operand.vmem [shape: f32[16,128], index: 9, kind: output, shape index: {0}]   ;;  %s1789_s10 = inlined_call_operand.hbm [shape: f32[1,1], index: 10, kind: output, shape index: {1}]  }
   0x1   :  { %v1309_v0 = vld [vmem:[%s1780_s1 + $0x38] sm:$0xff]  ;;  %v1308_v4 = vld [vmem:[%s1780_s1 + $0x30] sm:$0xff]  ;;  %v1307_v8 = vld [vmem:[%s1780_s1 + $0x28] sm:$0xff] }
   0x2   :  { %v1317_v1 = vld [vmem:[%s1780_s1 + $0x78] sm:$0xff]  ;;  %608 = vmatpush.bf16.msra.mxu0 %v1309_v0  ;;  %v1316_v5 = vld [vmem:[%s1780_s1 + $0x70] sm:$0xff]  ;;  %v1315_v9 = vld [vmem:[%s1780_s1 + $0x68] sm:$0xff] }
   0x3   :  { %v1325_v2 = vld [vmem:[%s1780_s1 + $0xb8] sm:$0xff]  ;;  %622 = vmatpush.bf16.msra.mxu1 %v1317_v1  ;;  %v1324_v6 = vld [vmem:[%s1780_s1 + $0xb0] sm:$0xff]  ;;  %v1323_v10 = vld [vmem:[%s1780_s1 + $0xa8] sm:$0xff] }
   0x4   :  { %v1333_v3 = vld [vmem:[%s1780_s1 + $0xf8] sm:$0xff]  ;;  %636 = vmatpush.bf16.msra.mxu2 %v1325_v2  ;;  %v1332_v7 = vld [vmem:[%s1780_s1 + $0xf0] sm:$0xff]  ;;  %v1331_v11 = vld [vmem:[%s1780_s1 + $0xe8] sm:$0xff] }
   0x5   :  { %650 = vmatpush.bf16.msra.mxu3 %v1333_v3  ;;  %v1306_v12 = vld [vmem:[%s1780_s1 + $0x20] sm:$0xff]  ;;  %v1305_v16 = vld [vmem:[%s1780_s1 + $0x18] sm:$0xff]  ;;  %v1304_v20 = vld [vmem:[%s1780_s1 + $0x10] sm:$0xff] }
   0x6   :  { %609 = vmatpush.bf16.msra.mxu0 %v1308_v4  ;;  %v1314_v13 = vld [vmem:[%s1780_s1 + $0x60] sm:$0xff]  ;;  %v1313_v17 = vld [vmem:[%s1780_s1 + $0x58] sm:$0xff]  ;;  %v1312_v21 = vld [vmem:[%s1780_s1 + $0x50] sm:$0xff] }
   0x7   :  { %623 = vmatpush.bf16.msra.mxu1 %v1316_v5  ;;  %v1322_v14 = vld [vmem:[%s1780_s1 + $0xa0] sm:$0xff]  ;;  %v1321_v18 = vld [vmem:[%s1780_s1 + $0x98] sm:$0xff]  ;;  %v1320_v22 = vld [vmem:[%s1780_s1 + $0x90] sm:$0xff] }
   0x8   :  { %637 = vmatpush.bf16.msra.mxu2 %v1324_v6  ;;  %v1330_v15 = vld [vmem:[%s1780_s1 + $0xe0] sm:$0xff]  ;;  %v1329_v19 = vld [vmem:[%s1780_s1 + $0xd8] sm:$0xff]  ;;  %v1328_v23 = vld [vmem:[%s1780_s1 + $0xd0] sm:$0xff] }
   0x9   :  { %651 = vmatpush.bf16.msra.mxu3 %v1332_v7  ;;  %v1303_v24 = vld [vmem:[%s1780_s1 + $0x8] sm:$0xff]  ;;  %v1302_v28 = vld [vmem:[%s1780_s1] sm:$0xff] }
   0xa   :  { %610 = vmatpush.bf16.msra.mxu0 %v1307_v8  ;;  %v1311_v25 = vld [vmem:[%s1780_s1 + $0x48] sm:$0xff] }
   0xb   :  { %624 = vmatpush.bf16.msra.mxu1 %v1315_v9  ;;  %v1319_v26 = vld [vmem:[%s1780_s1 + $0x88] sm:$0xff] }
   0xc   :  { %638 = vmatpush.bf16.msra.mxu2 %v1323_v10  ;;  %v1327_v27 = vld [vmem:[%s1780_s1 + $0xc8] sm:$0xff] }
   0xd   :  { %652 = vmatpush.bf16.msra.mxu3 %v1331_v11 }
   0xe   :  { %611 = vmatpush.bf16.msra.mxu0 %v1306_v12 }
   0xf   :  { %625 = vmatpush.bf16.msra.mxu1 %v1314_v13 }
  0x10   :  { %639 = vmatpush.bf16.msra.mxu2 %v1322_v14 }
  0x11   :  { %653 = vmatpush.bf16.msra.mxu3 %v1330_v15 }
  0x12   :  { %612 = vmatpush.bf16.msra.mxu0 %v1305_v16 }
  0x13   :  { %626 = vmatpush.bf16.msra.mxu1 %v1313_v17 }
  0x14   :  { %640 = vmatpush.bf16.msra.mxu2 %v1321_v18 }
  0x15   :  { %654 = vmatpush.bf16.msra.mxu3 %v1329_v19 }
  0x16   :  { %613 = vmatpush.bf16.msra.mxu0 %v1304_v20 }
  0x17   :  { %627 = vmatpush.bf16.msra.mxu1 %v1312_v21 }
  0x18   :  { %641 = vmatpush.bf16.msra.mxu2 %v1320_v22 }
  0x19   :  { %655 = vmatpush.bf16.msra.mxu3 %v1328_v23 }
  0x1a   :  { %17 = vsyncpa [#allocation5], 0  ;;  %v1310_v29 = vld [vmem:[%s1780_s1 + $0x40] sm:$0xff]  ;;  %614 = vmatpush.bf16.msra.mxu0 %v1303_v24  ;;  %v1341_v32 = vld [vmem:[%s1780_s1 + $0x138] sm:$0xff]  ;;  %s1428_s18 = smov 1.0   ;;  %vm938_vm4 = vcmask 7168  }
  0x1b   :  { %v1318_v30 = vld [vmem:[%s1780_s1 + $0x80] sm:$0xff]  ;;  %628 = vmatpush.bf16.msra.mxu1 %v1311_v25  ;;  %v1349_v33 = vld [vmem:[%s1780_s1 + $0x178] sm:$0xff]  ;;  %v982_v34 = vld [vmem:[%s1779_s0 + $0x8] sm:$0xf]  ;;  %s960_s22 = sshll.u32 %s1789_s10, 4  ;;  %s1429_s24 = smov [#allocation4]   ;;  %s961_s22 = int_to_ptr.hbm [resolvable:$true] %s960_s22 }
  0x1c   :  { %v1326_v31 = vld [vmem:[%s1780_s1 + $0xc0] sm:$0xff]  ;;  %v1299_v35 = vld [vmem:[%s1779_s0 + $0x24] sm:$0xf0]  ;;  %642 = vmatpush.bf16.msra.mxu2 %v1319_v26  ;;  %v1295_v36 = vld [vmem:[%s1779_s0 + $0xc] sm:$0xf] }
  0x1d   :  { %656 = vmatpush.bf16.msra.mxu3 %v1327_v27  ;;  %v984_v37 = vld [vmem:[%s1779_s0 + $0x28] sm:$0xf0]  ;;  %v974_v38 = vld [vmem:[%s1779_s0] sm:$0xf]  ;;  %v1294_v40 = vld [vmem:[%s1779_s0 + $0x4] sm:$0xf]  ;;  %v983_v44 = vor.u32 %v1299_v35, %v982_v34 }
  0x1e   :  { %v1298_v39 = vld [vmem:[%s1779_s0 + $0x1c] sm:$0xf0]  ;;  %v976_v41 = vld [vmem:[%s1779_s0 + $0x20] sm:$0xf0]  ;;  %v1357_v42 = vld [vmem:[%s1780_s1 + $0x1b8] sm:$0xff]  ;;  %615 = vmatpush.bf16.msra.mxu0 %v1302_v28  ;;  %v987_v45 = vor.u32 %v1295_v36, %v984_v37 }
  0x1f   :  { %v1365_v43 = vld [vmem:[%s1780_s1 + $0x1f8] sm:$0xff]  ;;  %629 = vmatpush.bf16.msra.mxu1 %v1310_v29  ;;  %v975_v46 = vor.u32 %v1298_v39, %v974_v38  ;;  %v979_v47 = vor.u32 %v1294_v40, %v976_v41  ;;  %v1340_v48 = vld [vmem:[%s1780_s1 + $0x130] sm:$0xff]  ;;  %v1339_v52 = vld [vmem:[%s1780_s1 + $0x128] sm:$0xff] }
  0x20   :  { %643 = vmatpush.bf16.msra.mxu2 %v1318_v30  ;;  %v1348_v49 = vld [vmem:[%s1780_s1 + $0x170] sm:$0xff]  ;;  %v1347_v53 = vld [vmem:[%s1780_s1 + $0x168] sm:$0xff]  ;;  %v1338_v56 = vld [vmem:[%s1780_s1 + $0x120] sm:$0xff] }
  0x21   :  { %657 = vmatpush.bf16.msra.mxu3 %v1326_v31  ;;  %v1356_v50 = vld [vmem:[%s1780_s1 + $0x1b0] sm:$0xff]  ;;  %616 = vmatmul.bf16.vlgmr.msra.gmra.mxu0 %v975_v46  ;;  %v1355_v54 = vld [vmem:[%s1780_s1 + $0x1a8] sm:$0xff]  ;;  %v1346_v57 = vld [vmem:[%s1780_s1 + $0x160] sm:$0xff] }
  0x22   :  { %664 = vmatpush.bf16.msrb.mxu0 %v1341_v32  ;;  %v1364_v51 = vld [vmem:[%s1780_s1 + $0x1f0] sm:$0xff]  ;;  %630 = vmatmul.bf16.vlgmr.msra.gmra.mxu1 %v979_v47  ;;  %v1363_v55 = vld [vmem:[%s1780_s1 + $0x1e8] sm:$0xff]  ;;  %v1354_v58 = vld [vmem:[%s1780_s1 + $0x1a0] sm:$0xff] }
  0x23   :  { %678 = vmatpush.bf16.msrb.mxu1 %v1349_v33  ;;  %644 = vmatmul.bf16.vlgmr.msra.gmra.mxu2 %v983_v44  ;;  %v1362_v59 = vld [vmem:[%s1780_s1 + $0x1e0] sm:$0xff]  ;;  %v1337_v60 = vld [vmem:[%s1780_s1 + $0x118] sm:$0xff]  ;;  %v1336_v0 = vld [vmem:[%s1780_s1 + $0x110] sm:$0xff] }
  0x24   :  { %692 = vmatpush.bf16.msrb.mxu2 %v1357_v42  ;;  %658 = vmatmul.bf16.vlgmr.msra.gmra.mxu3 %v987_v45  ;;  %v1345_v61 = vld [vmem:[%s1780_s1 + $0x158] sm:$0xff]  ;;  %v1344_v1 = vld [vmem:[%s1780_s1 + $0x150] sm:$0xff]  ;;  %v1335_v4 = vld [vmem:[%s1780_s1 + $0x108] sm:$0xff] }
  0x25   :  { %706 = vmatpush.bf16.msrb.mxu3 %v1365_v43  ;;  %v1353_v62 = vld [vmem:[%s1780_s1 + $0x198] sm:$0xff]  ;;  %v1352_v2 = vld [vmem:[%s1780_s1 + $0x190] sm:$0xff]  ;;  %v1343_v5 = vld [vmem:[%s1780_s1 + $0x148] sm:$0xff] }
  0x26   :  { %665 = vmatpush.bf16.msrb.mxu0 %v1340_v48  ;;  %v1361_v63 = vld [vmem:[%s1780_s1 + $0x1d8] sm:$0xff]  ;;  %v1360_v3 = vld [vmem:[%s1780_s1 + $0x1d0] sm:$0xff]  ;;  %v1351_v6 = vld [vmem:[%s1780_s1 + $0x188] sm:$0xff] }
  0x27   :  { %679 = vmatpush.bf16.msrb.mxu1 %v1348_v49  ;;  %v1359_v7 = vld [vmem:[%s1780_s1 + $0x1c8] sm:$0xff]  ;;  %v1334_v8 = vld [vmem:[%s1780_s1 + $0x100] sm:$0xff]  ;;  %v990_v12 = vld [vmem:[%s1779_s0 + $0x10] sm:$0xf] }
  0x28   :  { %693 = vmatpush.bf16.msrb.mxu2 %v1356_v50  ;;  %v1342_v9 = vld [vmem:[%s1780_s1 + $0x140] sm:$0xff]  ;;  %v1300_v13 = vld [vmem:[%s1779_s0 + $0x2c] sm:$0xf0]  ;;  %v1296_v14 = vld [vmem:[%s1779_s0 + $0x14] sm:$0xf] }
  0x29   :  { %707 = vmatpush.bf16.msrb.mxu3 %v1364_v51  ;;  %v1350_v10 = vld [vmem:[%s1780_s1 + $0x180] sm:$0xff]  ;;  %v992_v15 = vld [vmem:[%s1779_s0 + $0x30] sm:$0xf0]  ;;  %v998_v16 = vld [vmem:[%s1779_s0 + $0x18] sm:$0xf]  ;;  %v991_v20 = vor.u32 %v1300_v13, %v990_v12 }
  0x2a   :  { %666 = vmatpush.bf16.msrb.mxu0 %v1339_v52  ;;  %v1358_v11 = vld [vmem:[%s1780_s1 + $0x1c0] sm:$0xff]  ;;  %v1301_v17 = vld [vmem:[%s1779_s0 + $0x34] sm:$0xf0]  ;;  %v1297_v18 = vld [vmem:[%s1779_s0 + $0x1c] sm:$0xf]  ;;  %v995_v21 = vor.u32 %v1296_v14, %v992_v15 }
  0x2b   :  { %680 = vmatpush.bf16.msrb.mxu1 %v1347_v53  ;;  %v1000_v19 = vld [vmem:[%s1779_s0 + $0x38] sm:$0xf0]  ;;  %v999_v22 = vor.u32 %v1301_v17, %v998_v16  ;;  %v1372_v27 = vld [vmem:[%s1782_s3 + $0x30] sm:$0xff]  ;;  %v1371_v30 = vld [vmem:[%s1782_s3 + $0x28] sm:$0xff] }
  0x2c   :  { %694 = vmatpush.bf16.msrb.mxu2 %v1355_v54  ;;  %v1003_v23 = vor.u32 %v1297_v18, %v1000_v19  ;;  %v1373_v25 = vld [vmem:[%s1782_s3 + $0x38] sm:$0xff]  ;;  %v1370_v33 = vld [vmem:[%s1782_s3 + $0x20] sm:$0xff]  ;;  %v1368_v42 = vld [vmem:[%s1782_s3 + $0x10] sm:$0xff] }
  0x2d   :  { %708 = vmatpush.bf16.msrb.mxu3 %v1363_v55  ;;  %v1369_v36 = vld [vmem:[%s1782_s3 + $0x18] sm:$0xff]  ;;  %v1367_v46 = vld [vmem:[%s1782_s3 + $0x8] sm:$0xff]  ;;  %v1383_v52 = vld [vmem:[%s1781_s2] ss:$0 sm:$0xff] }
  0x2e   :  { %667 = vmatpush.bf16.msrb.mxu0 %v1338_v56  ;;  %v1366_v54 = vld [vmem:[%s1782_s3] sm:$0xff] }
  0x2f   :  { %681 = vmatpush.bf16.msrb.mxu1 %v1346_v57 }
  0x30   :  { %695 = vmatpush.bf16.msrb.mxu2 %v1354_v58 }
  0x31   :  { %709 = vmatpush.bf16.msrb.mxu3 %v1362_v59 }
  0x32   :  { %668 = vmatpush.bf16.msrb.mxu0 %v1337_v60 }
  0x33   :  { %682 = vmatpush.bf16.msrb.mxu1 %v1345_v61 }
  0x34   :  { %696 = vmatpush.bf16.msrb.mxu2 %v1353_v62 }
  0x35   :  { %710 = vmatpush.bf16.msrb.mxu3 %v1361_v63 }
  0x36   :  { %669 = vmatpush.bf16.msrb.mxu0 %v1336_v0 }
  0x37   :  { %683 = vmatpush.bf16.msrb.mxu1 %v1344_v1 }
  0x38   :  { %697 = vmatpush.bf16.msrb.mxu2 %v1352_v2 }
  0x39   :  { %711 = vmatpush.bf16.msrb.mxu3 %v1360_v3 }
  0x3a   :  { %670 = vmatpush.bf16.msrb.mxu0 %v1335_v4 }
  0x3b   :  { %684 = vmatpush.bf16.msrb.mxu1 %v1343_v5 }
  0x3c   :  { %698 = vmatpush.bf16.msrb.mxu2 %v1351_v6 }
  0x3d   :  { %712 = vmatpush.bf16.msrb.mxu3 %v1359_v7 }
  0x3e   :  { %671 = vmatpush.bf16.msrb.mxu0 %v1334_v8 }
  0x3f   :  { %685 = vmatpush.bf16.msrb.mxu1 %v1342_v9 }
  0x40   :  { %699 = vmatpush.bf16.msrb.mxu2 %v1350_v10 }
  0x41   :  { %713 = vmatpush.bf16.msrb.mxu3 %v1358_v11  ;;  %672 = vmatmul.bf16.vlgmr.msrb.gmra.mxu0 %v991_v20  ;;  %v1384_v20 = vld [vmem:[%s1783_s4] ss:$0 sm:$0xff] }
  0x42   :  { %686 = vmatmul.bf16.vlgmr.msrb.gmra.mxu1 %v995_v21  ;;  %816 = vmatpush.bf16.msra.mxu0 %v1373_v25  ;;  %v832_v25 = vld [vmem:[%s1784_s5] sm:$0xff] }
  0x43   :  { %700 = vmatmul.bf16.vlgmr.msrb.gmra.mxu2 %v999_v22 }
  0x44   :  { %714 = vmatmul.bf16.vlgmr.msrb.gmra.mxu3 %v1003_v23 }
  0x46   :  { %817 = vmatpush.bf16.msra.mxu0 %v1372_v27  ;;  %v833_v27 = vld [vmem:[%s1784_s5 + $0x8] sm:$0xff] }
  0x4a   :  { %818 = vmatpush.bf16.msra.mxu0 %v1371_v30 }
  0x4e   :  { %819 = vmatpush.bf16.msra.mxu0 %v1370_v33 }
  0x52   :  { %820 = vmatpush.bf16.msra.mxu0 %v1369_v36  ;;  %v834_v36 = vlaneseq }
  0x56   :  { %821 = vmatpush.bf16.msra.mxu0 %v1368_v42 }
  0x5a   :  { %822 = vmatpush.bf16.msra.mxu0 %v1367_v46 }
  0x5e   :  { %823 = vmatpush.bf16.msra.mxu0 %v1366_v54 }
  0x9e   :  { %v617_v24 = vpop.f32.mrf.mxu0 }
  0x9f   :  { %v631_v26 = vpop.f32.mrf.mxu1 }
  0xa0   :  { %v632_v31 = vadd.f32 %v631_v26, %v617_v24  ;;  %v1425_v26 = vmov 0  }
  0xa1   :  { %1381 = vset.pattern.permute.xlu2 %v1425_v26  ;;  %1382 = vset.pattern.permute.xlu0 %v1425_v26 }
  0xa2   :  { %837 = vperm.xlu2 %1381, %v832_v25  }
  0xa6   :  { %v645_v28 = vpop.f32.mrf.mxu2  ;;  %v619_v32 = vpop.f32.mrf.mxu0 }
  0xa7   :  { %v659_v29 = vpop.f32.mrf.mxu3  ;;  %v633_v34 = vpop.f32.mrf.mxu1  ;;  %v646_v35 = vadd.f32 %v645_v28, %v632_v31 }
  0xa8   :  { %v634_v40 = vadd.f32 %v633_v34, %v619_v32 }
  0xa9   :  { %v660_v39 = vadd.f32 %v659_v29, %v646_v35 }
  0xaa   :  { %840 = vperm.xlu2 %1381, %v833_v27  }
  0xae   :  { %v647_v37 = vpop.f32.mrf.mxu2 }
  0xaf   :  { %v661_v38 = vpop.f32.mrf.mxu3  ;;  %v648_v45 = vadd.f32 %v647_v37, %v634_v40  ;;  %v835_v37 = vand.u32 127, %v834_v36  ;;  %v1426_v40 = vmov 0.0  }
  0xb1   :  { %v662_v50 = vadd.f32 %v661_v38, %v648_v45 }
  0xbe   :  { %v673_v41 = vpop.f32.mrf.mxu0 }
  0xbf   :  { %v674_v43 = vadd.f32 %v673_v41, %v660_v39  ;;  %v687_v44 = vpop.f32.mrf.mxu1  ;;  %v1385_v39 = vld [vmem:[%s1786_s7] ss:$0 sm:$0xff] }
  0xc1   :  { %v688_v47 = vadd.f32 %v687_v44, %v674_v43 }
  0xc6   :  { %v701_v48 = vpop.f32.mrf.mxu2  ;;  %v675_v53 = vpop.f32.mrf.mxu0 }
  0xc7   :  { %v715_v49 = vpop.f32.mrf.mxu3  ;;  %v702_v51 = vadd.f32 %v701_v48, %v688_v47  ;;  %v676_v56 = vadd.f32 %v675_v53, %v662_v50  ;;  %v689_v58 = vpop.f32.mrf.mxu1 }
  0xc9   :  { %v716_v55 = vadd.f32 %v715_v49, %v702_v51  ;;  %v690_v60 = vadd.f32 %v689_v58, %v676_v56  ;;  %v1386_v58 = vld [vmem:[%s1785_s6] ss:$0 sm:$0xff]  ;;  %s1427_s6 = smov 0.0  }
  0xca   :  { %s927_s17 = smax.f32 %s1427_s6, %s1787_s8 }
  0xcb   :  { %v720_v57 = vadd.f32 %v1383_v52, %v716_v55  ;;  %s928_s19 = smin.f32 %s1428_s18, %s927_s17 }
  0xcc   :  { %s932_s20 = ssub.f32 1.0, %s928_s19  ;;  %v929_v26 = vstv %s928_s19 }
  0xcd   :  { %v729_v59 = vmul.f32 %v720_v57, %v720_v57 }
  0xce   :  { %v703_v61 = vpop.f32.mrf.mxu2 }
  0xcf   :  { %v731_v62 = vmul.f32 %v729_v59, %v720_v57  ;;  %v704_v63 = vadd.f32 %v703_v61, %v690_v60  ;;  %v717_v0 = vpop.f32.mrf.mxu3 }
  0xd1   :  { %v733_v1 = vmul.f32 0.044715, %v731_v62  ;;  %v718_v2 = vadd.f32 %v717_v0, %v704_v63 }
  0xd3   :  { %v735_v3 = vadd.f32 %v733_v1, %v720_v57  ;;  %v721_v4 = vadd.f32 %v1383_v52, %v718_v2 }
  0xd5   :  { %v737_v5 = vmul.f32 0.7978846, %v735_v3  ;;  %v730_v6 = vmul.f32 %v721_v4, %v721_v4 }
  0xd7   :  { %v732_v7 = vmul.f32 %v730_v6, %v721_v4  ;;  %1387 = vtanh.f32 %v737_v5 }
  0xd9   :  { %v734_v8 = vmul.f32 0.044715, %v732_v7 }
  0xdb   :  { %v736_v9 = vadd.f32 %v734_v8, %v721_v4 }
  0xdd   :  { %v738_v10 = vmul.f32 0.7978846, %v736_v9  ;;  %v1388_v11 = vpop.eup %1387 }
  0xde   :  { %v741_v12 = vadd.f32 1.0, %v1388_v11 }
  0xdf   :  { %1389 = vtanh.f32 %v738_v10 }
  0xe0   :  { %v743_v15 = vmul.f32 0.5, %v741_v12 }
  0xe2   :  { %v745_v17 = vmul.f32 %v743_v15, %v720_v57 }
  0xe5   :  { %v1390_v13 = vpop.eup %1389 }
  0xe6   :  { %v742_v14 = vadd.f32 1.0, %v1390_v13 }
  0xe8   :  { %v744_v16 = vmul.f32 0.5, %v742_v14 }
  0xea   :  { %v746_v18 = vmul.f32 %v744_v16, %v721_v4 }
  0xec   :  { %v747_v19 = vpack.c.bf16 %v746_v18, %v745_v17 }
  0xee   :  { %824 = vmatmul.bf16.vlgmr.msra.gmra.mxu0 %v747_v19 }
  0xfc   :  { %v838_v38 = vpop.permute.xlu2 %837 }
  0xfd   :  { %vm842_vm0 = vcmp.eq.s32.totalorder %v835_v37, %v838_v38 }
  0xfe   :  { %v1292_v41 = vsel %vm842_vm0, 1.0, %v1426_v40 }
  0xff   :  { %v896_v42 = vmul.f32 %v1385_v39, %v1292_v41  ;;  %v886_v60 = vmul.f32 %v1386_v58, %v1292_v41 }
 0x101   :  { %898 = vadd.xlane.f32.xlu2 %v896_v42 }
 0x104   :  { %v841_v49 = vpop.permute.xlu2 %840 }
 0x105   :  { %vm843_vm1 = vcmp.eq.s32.totalorder %v835_v37, %v841_v49 }
 0x106   :  { %v1293_v54 = vsel %vm843_vm1, 1.0, %v1426_v40 }
 0x107   :  { %v897_v56 = vmul.f32 %v1385_v39, %v1293_v54  ;;  %v887_v59 = vmul.f32 %v1386_v58, %v1293_v54 }
 0x16b   :  { %v825_v21 = vpop.f32.mrf.mxu0 }
 0x16c   :  { %v826_v22 = vadd.f32 %v1384_v20, %v825_v21 }
 0x16e   :  { %830 = vst [vmem:[%s1788_s9] sm:$0xff] %v826_v22  ;;  %848 = vmax.xlane.f32.xlu0 %v826_v22 }
 0x173   :  { %v827_v23 = vpop.f32.mrf.mxu0 }
 0x174   :  { %v828_v24 = vadd.f32 %v1384_v20, %v827_v23  ;;  %v899_v13 = vpop.xlane.xlu2 %898 }
 0x176   :  { %831 = vst [vmem:[%s1788_s9 + $0x8] sm:$0xff] %v828_v24  ;;  %850 = vmax.xlane.f32.xlu0 %v828_v24 }
 0x1e1   :  { %v849_v28 = vpop.xlane.xlu0 %848 }
 0x1e2   :  { %v852_v29 = vsub.f32 %v826_v22, %v849_v28 }
 0x1e4   :  { %v854_v30 = vmul.f32 1.442695, %v852_v29 }
 0x1e6   :  { %1391 = vpow2.f32 %v854_v30 }
 0x1e9   :  { %v851_v31 = vpop.xlane.xlu0 %850 }
 0x1ea   :  { %v853_v32 = vsub.f32 %v828_v24, %v851_v31 }
 0x1ec   :  { %v1392_v33 = vpop.eup %1391  ;;  %v856_v34 = vmul.f32 1.442695, %v853_v32 }
 0x1ed   :  { %858 = vadd.xlane.f32.xlu1 %v1392_v33 }
 0x1ee   :  { %1393 = vpow2.f32 %v856_v34 }
 0x1f4   :  { %v1394_v35 = vpop.eup %1393 }
 0x1f5   :  { %860 = vadd.xlane.f32.xlu1 %v1394_v35 }
 0x260   :  { %v859_v43 = vpop.xlane.xlu1 %858 }
 0x261   :  { %1395 = vlog2.f32 %v859_v43 }
 0x267   :  { %v1396_v44 = vpop.eup %1395 }
 0x268   :  { %v863_v45 = vmul.f32 0.6931472, %v1396_v44  ;;  %v861_v46 = vpop.xlane.xlu1 %860 }
 0x269   :  { %1397 = vlog2.f32 %v861_v46 }
 0x26a   :  { %v866_v47 = vadd.f32 %v863_v45, %v849_v28  ;;  %v933_v28 = vstv %s932_s20 }
 0x26c   :  { %v868_v48 = vsub.f32 %v866_v47, %v826_v22 }
 0x26e   :  { %v870_v50 = vmul.f32 %v1292_v41, %v868_v48 }
 0x26f   :  { %v1398_v51 = vpop.eup %1397 }
 0x270   :  { %v865_v52 = vmul.f32 0.6931472, %v1398_v51  ;;  %872 = vadd.xlane.f32.xlu0 %v870_v50 }
 0x272   :  { %v867_v53 = vadd.f32 %v865_v52, %v851_v31 }
 0x274   :  { %v869_v55 = vsub.f32 %v867_v53, %v828_v24 }
 0x276   :  { %v871_v57 = vmul.f32 %v1293_v54, %v869_v55 }
 0x278   :  { %900 = vadd.xlane.f32.xlu0 %v897_v56  ;;  %874 = vadd.xlane.f32.xlu1 %v871_v57 }
 0x280   :  { %890 = vadd.xlane.f32.xlu0 %v887_v59  ;;  %888 = vadd.xlane.f32.xlu1 %v886_v60 }
 0x2e3   :  { %v873_v61 = vpop.xlane.xlu0 %872 }
 0x2e4   :  { %v876_v62 = vsub.f32 0.0, %v873_v61  ;;  %v934_v33 = vmul.f32 %v933_v28, %v873_v61 }
 0x2e6   :  { %v878_v63 = vmul.f32 1.442695, %v876_v62 }
 0x2e8   :  { %1399 = vpow2.f32 %v878_v63 }
 0x2eb   :  { %v875_v0 = vpop.xlane.xlu1 %874  ;;  %v901_v18 = vpop.xlane.xlu0 %900 }
 0x2ec   :  { %v877_v1 = vsub.f32 0.0, %v875_v0  ;;  %v935_v35 = vmul.f32 %v933_v28, %v875_v0 }
 0x2ee   :  { %v1400_v2 = vpop.eup %1399  ;;  %v880_v3 = vmul.f32 1.442695, %v877_v1 }
 0x2ef   :  { %v902_v4 = vsub.f32 1.0, %v1400_v2 }
 0x2f0   :  { %1401 = vpow2.f32 %v880_v3 }
 0x2f1   :  { %v904_v5 = vmax.f32 %v902_v4, 0.0 }
 0x2f3   :  { %v908_v6 = vmax.f32 %v904_v5, 1e-38  ;;  %vm906_vm2 = vcmp.gt.f32.partialorder %v904_v5, 0.0  ;;  %v889_v22 = vpop.xlane.xlu1 %888  ;;  %v891_v30 = vpop.xlane.xlu0 %890 }
 0x2f5   :  { %1403 = vlog2.f32 %v908_v6 }
 0x2f6   :  { %v1402_v7 = vpop.eup %1401 }
 0x2f7   :  { %v903_v8 = vsub.f32 1.0, %v1402_v7 }
 0x2f9   :  { %v905_v9 = vmax.f32 %v903_v8, 0.0 }
 0x2fb   :  { %v1404_v10 = vpop.eup %1403  ;;  %v909_v11 = vmax.f32 %v905_v9, 1e-38  ;;  %vm907_vm3 = vcmp.gt.f32.partialorder %v905_v9, 0.0 }
 0x2fc   :  { %v911_v12 = vmul.f32 0.6931472, %v1404_v10 }
 0x2fd   :  { %1405 = vlog2.f32 %v909_v11 }
 0x2fe   :  { %v914_v14 = vmul.f32 %v911_v12, %v899_v13 }
 0x300   :  { %v916_v15 = vmul.f32 1.442695, %v914_v14 }
 0x302   :  { %1407 = vpow2.f32 %v916_v15 }
 0x303   :  { %v1406_v16 = vpop.eup %1405 }
 0x304   :  { %v913_v17 = vmul.f32 0.6931472, %v1406_v16 }
 0x306   :  { %v915_v19 = vmul.f32 %v913_v17, %v901_v18 }
 0x308   :  { %v1408_v20 = vpop.eup %1407  ;;  %v918_v21 = vmul.f32 1.442695, %v915_v19 }
 0x309   :  { %v920_v23 = vsel %vm906_vm2, %v1408_v20, 0.0 }
 0x30a   :  { %1409 = vpow2.f32 %v918_v21  ;;  %v922_v24 = vmul.f32 %v920_v23, %v889_v22 }
 0x30c   :  { %v924_v25 = vmul.f32 %v922_v24, %v873_v61 }
 0x30e   :  { %v930_v31 = vmul.f32 %v929_v26, %v924_v25 }
 0x310   :  { %v1410_v27 = vpop.eup %1409  ;;  %v936_v37 = vadd.f32 %v934_v33, %v930_v31 }
 0x311   :  { %v921_v29 = vsel %vm907_vm3, %v1410_v27, 0.0 }
 0x312   :  { %v923_v32 = vmul.f32 %v921_v29, %v891_v30  ;;  %v939_v39 = vsel %vm938_vm4, %v936_v37, 0.0 }
 0x314   :  { %v925_v34 = vmul.f32 %v923_v32, %v875_v0 }
 0x316   :  { %v931_v36 = vmul.f32 %v929_v26, %v925_v34 }
 0x318   :  { %v937_v38 = vadd.f32 %v935_v35, %v931_v36 }
 0x31a   :  { %v940_v40 = vsel %vm938_vm4, %v937_v38, 0.0 }
 0x31b   :  { %v941_v41 = vadd.f32 %v940_v40, %v939_v39 }
 0x31d   :  { %942 = vadd.xlane.f32.xlu1 %v941_v41 }
 0x390   :  { %v943_v42 = vpop.xlane.xlu1 %942 }
 0x391   :  { %v944_v43 = vrot.slane %v943_v42, 4 }
 0x393   :  { %v945_v44 = vadd.f32 %v944_v43, %v943_v42 }
 0x395   :  { %v946_v45 = vrot.slane %v945_v44, 2 }
 0x397   :  { %v947_v46 = vadd.f32 %v946_v45, %v945_v44 }
 0x399   :  { %v948_v47 = vrot.slane %v947_v46, 1 }
 0x39b   :  { %v949_v48 = vadd.f32 %v948_v47, %v947_v46 }
 0x39d   :  { %1374 = vpush %v949_v48 }
 0x3ce   :  { %s1375_s23 = spop %1374 }
 0x3cf   :  { %952 = sst [smem:[#allocation4]] %s1375_s23 }
 0x3d0   :  { %963 = dma.smem_to_hbm %s1429_s24, 16, %s961_s22, [#allocation5]  }
 0x3d1   :  { %1423 = dma.done.wait [#allocation5], 16  }
 0x3d2   :  { %1424 = vsyncadd [#allocation5], 4294967280 }
 0x3d3   :  { %970 = sfence }
 0x3d4   :  { %971 = vsyncpa [#allocation5], 1 }

</bundles_post_ra>
